<compile_context>
chip_gen: v5e
topology: v5e:2x2
jax: 0.10.0
libtpu: 0.0.40
codegen_flags: <defaults>
</compile_context>

<pallas_src>
import jax
import jax.numpy as jnp
from jax.experimental import pallas as pl
from jax.experimental.pallas import tpu as pltpu

LANE = 128


def simple_nn_kernel(x_ref, w1_ref, b1_ref, w2_ref, b2_ref, o_ref):
    # x:  (2, TB)   batch-on-lanes
    # w1: (16, 2)   PyTorch (out, in) layout, used as-is (h = W1 @ xT)
    # b1: (16, 1)
    # w2: (2, 16)
    # b2: (2, 1)
    x0 = x_ref[0:1, :]  # (1, TB)
    x1 = x_ref[1:2, :]  # (1, TB)

    # fc1 on the VPU: K=2 -> two broadcast FMAs per hidden row, keeps the MXU idle.
    h = w1_ref[:, 0:1] * x0 + w1_ref[:, 1:2] * x1 + b1_ref[...]  # (16, TB)
    h = jnp.maximum(h, 0.0)

    # fc2: (2,16) @ (16,TB) -> (2,TB); N = TB is lane-dense.
    y = jnp.dot(w2_ref[...], h, preferred_element_type=jnp.float32) + b2_ref[...]
    o_ref[...] = y.astype(o_ref.dtype)


def simple_nn_forward(x, w1, b1, w2, b2, *, block_b=512):
    """x: (B, 2) f32; w1: (16, 2); b1: (16,); w2: (2, 16); b2: (2,). Returns (B, 2)."""
    B, in_features = x.shape
    hid = w1.shape[0]
    out_features = w2.shape[0]

    # Batch tile: multiple of 128 lanes; small batches collapse to a single tile.
    b_lane = ((B + LANE - 1) // LANE) * LANE
    tb = min(((block_b + LANE - 1) // LANE) * LANE, b_lane)
    b_pad = ((B + tb - 1) // tb) * tb
    grid_b = b_pad // tb

    # Lane-dense layout: batch on the last (lane) axis, zero-padded to b_pad.
    xT = jnp.pad(x.T, ((0, 0), (0, b_pad - B)))          # (2, b_pad)
    b1c = b1.reshape(hid, 1)                              # (16, 1)
    b2c = b2.reshape(out_features, 1)                     # (2, 1)

    yT = pl.pallas_call(
        simple_nn_kernel,
        out_shape=jax.ShapeDtypeStruct((out_features, b_pad), jnp.float32),
        grid_spec=pltpu.PrefetchScalarGridSpec(
            num_scalar_prefetch=0,
            grid=(grid_b,),
            in_specs=[
                pl.BlockSpec((in_features, tb), lambda i: (0, i)),   # xT tile
                pl.BlockSpec(w1.shape, lambda i: (0, 0)),            # weights resident
                pl.BlockSpec((hid, 1), lambda i: (0, 0)),
                pl.BlockSpec(w2.shape, lambda i: (0, 0)),
                pl.BlockSpec((out_features, 1), lambda i: (0, 0)),
            ],
            out_specs=pl.BlockSpec((out_features, tb), lambda i: (0, i)),
        ),
        compiler_params=pltpu.CompilerParams(
            dimension_semantics=("parallel",),
        ),
    )(xT, w1, b1c, w2, b2c)

    return yT[:, :B].T                                    # back to (B, 2)


def init_params(key):
    # Deterministic init mimicking PyTorch nn.Linear default:
    # U(-1/sqrt(fan_in), 1/sqrt(fan_in)) for both weight and bias.
    k1, k2, k3, k4 = jax.random.split(key, 4)
    in1, hid, out = 2, 16, 2

    bound1 = 1.0 / jnp.sqrt(in1)
    w1 = jax.random.uniform(k1, (hid, in1), jnp.float32, -bound1, bound1)
    b1 = jax.random.uniform(k2, (hid,), jnp.float32, -bound1, bound1)

    bound2 = 1.0 / jnp.sqrt(hid)
    w2 = jax.random.uniform(k3, (out, hid), jnp.float32, -bound2, bound2)
    b2 = jax.random.uniform(k4, (out,), jnp.float32, -bound2, bound2)
    return w1, b1, w2, b2


if __name__ == "__main__":
    key = jax.random.PRNGKey(0)
    pkey, xkey = jax.random.split(key)

    w1, b1, w2, b2 = init_params(pkey)
    batch = 8
    x = jax.random.normal(xkey, (batch, 2), jnp.float32)

    y = simple_nn_forward(x, w1, b1, w2, b2)
    y = jax.block_until_ready(y)

    # Pure-JAX reference check (PyTorch semantics: x @ W^T + b).
    ref = jnp.maximum(x @ w1.T + b1, 0.0) @ w2.T + b2
    assert y.shape == (batch, 2)
    assert jnp.allclose(y, ref, atol=1e-5, rtol=1e-5)

    print("KERNEL_OK")
</pallas_src>

<mosaic_0001>
module attributes {stable_mosaic.version = 11 : i64} {
  func.func @simple_nn_kernel(%arg0: i32, %arg1: memref<2x128xf32, #tpu.memory_space<vmem>>, %arg2: memref<16x2xf32, #tpu.memory_space<vmem>>, %arg3: memref<16x1xf32, #tpu.memory_space<vmem>>, %arg4: memref<2x16xf32, #tpu.memory_space<vmem>>, %arg5: memref<2x1xf32, #tpu.memory_space<vmem>>, %arg6: memref<2x128xf32, #tpu.memory_space<vmem>>) attributes {dimension_semantics = [#tpu.dimension_semantics<parallel>], iteration_bounds = array<i64: 1>, scalar_prefetch = 0 : i64, scratch_operands = 0 : i64, tpu.core_type = #tpu.core_type<tc>, window_params = [{transform_indices = @transform_0, window_bounds = array<i64: 2, 128>}, {pipeline_mode = #tpu.pipeline_mode<synchronous>, transform_indices = @transform_1, window_bounds = array<i64: 16, 2>}, {pipeline_mode = #tpu.pipeline_mode<synchronous>, transform_indices = @transform_2, window_bounds = array<i64: 16, 1>}, {pipeline_mode = #tpu.pipeline_mode<synchronous>, transform_indices = @transform_3, window_bounds = array<i64: 2, 16>}, {pipeline_mode = #tpu.pipeline_mode<synchronous>, transform_indices = @transform_4, window_bounds = array<i64: 2, 1>}, {transform_indices = @transform_5, window_bounds = array<i64: 2, 128>}]} {
    %c0 = arith.constant 0 : index
    %c0_0 = arith.constant 0 : index
    %0 = vector.load %arg1[%c0, %c0_0] : memref<2x128xf32, #tpu.memory_space<vmem>>, vector<1x128xf32>
    %c1 = arith.constant 1 : index
    %c0_1 = arith.constant 0 : index
    %1 = vector.load %arg1[%c1, %c0_1] : memref<2x128xf32, #tpu.memory_space<vmem>>, vector<1x128xf32>
    %c0_2 = arith.constant 0 : index
    %c0_3 = arith.constant 0 : index
    %2 = vector.load %arg2[%c0_2, %c0_3] : memref<16x2xf32, #tpu.memory_space<vmem>>, vector<16x1xf32>
    %3 = vector.broadcast %2 : vector<16x1xf32> to vector<16x128xf32>
    %4 = vector.broadcast %0 : vector<1x128xf32> to vector<16x128xf32>
    %5 = arith.mulf %3, %4 : vector<16x128xf32>
    %c0_4 = arith.constant 0 : index
    %c1_5 = arith.constant 1 : index
    %6 = vector.load %arg2[%c0_4, %c1_5] : memref<16x2xf32, #tpu.memory_space<vmem>>, vector<16x1xf32>
    %7 = vector.broadcast %6 : vector<16x1xf32> to vector<16x128xf32>
    %8 = vector.broadcast %1 : vector<1x128xf32> to vector<16x128xf32>
    %9 = arith.mulf %7, %8 : vector<16x128xf32>
    %10 = arith.addf %5, %9 : vector<16x128xf32>
    %c0_6 = arith.constant 0 : index
    %c0_7 = arith.constant 0 : index
    %11 = vector.load %arg3[%c0_6, %c0_7] : memref<16x1xf32, #tpu.memory_space<vmem>>, vector<16x1xf32>
    %12 = vector.broadcast %11 : vector<16x1xf32> to vector<16x128xf32>
    %13 = arith.addf %10, %12 : vector<16x128xf32>
    %cst = arith.constant 0.000000e+00 : f32
    %14 = vector.broadcast %cst : f32 to vector<16x128xf32>
    %15 = arith.maximumf %13, %14 : vector<16x128xf32>
    %c0_8 = arith.constant 0 : index
    %c0_9 = arith.constant 0 : index
    %16 = vector.load %arg4[%c0_8, %c0_9] : memref<2x16xf32, #tpu.memory_space<vmem>>, vector<2x16xf32>
    %cst_10 = arith.constant dense<0.000000e+00> : vector<2x128xf32>
    %17 = tpu.matmul %16, %15, %cst_10 {dimension_numbers = #tpu.dot_dimension_numbers<[1], [0], [0], [1], [0, 0, 1, 1], [], []>} : vector<2x16xf32>, vector<16x128xf32>, vector<2x128xf32> -> vector<2x128xf32>
    %c0_11 = arith.constant 0 : index
    %c0_12 = arith.constant 0 : index
    %18 = vector.load %arg5[%c0_11, %c0_12] : memref<2x1xf32, #tpu.memory_space<vmem>>, vector<2x1xf32>
    %19 = vector.broadcast %18 : vector<2x1xf32> to vector<2x128xf32>
    %20 = arith.addf %17, %19 : vector<2x128xf32>
    %c0_13 = arith.constant 0 : index
    %c0_14 = arith.constant 0 : index
    %21 = vector.load %arg6[%c0_13, %c0_14] : memref<2x128xf32, #tpu.memory_space<vmem>>, vector<2x128xf32>
    tpu.vector_store %arg6[%c0_13, %c0_14], %20 {strides = array<i32>} : memref<2x128xf32, #tpu.memory_space<vmem>>, vector<2x128xf32>,
    return
  }
  func.func @transform_0(%arg0: i32) -> (i32, i32) {
    %c0_i32 = arith.constant 0 : i32
    %c0_i32_0 = arith.constant 0 : i32
    return %c0_i32, %arg0 : i32, i32
  }
  func.func @transform_1(%arg0: i32) -> (i32, i32) {
    %c0_i32 = arith.constant 0 : i32
    %c0_i32_0 = arith.constant 0 : i32
    %c0_i32_1 = arith.constant 0 : i32
    return %c0_i32, %c0_i32_0 : i32, i32
  }
  func.func @transform_2(%arg0: i32) -> (i32, i32) {
    %c0_i32 = arith.constant 0 : i32
    %c0_i32_0 = arith.constant 0 : i32
    %c0_i32_1 = arith.constant 0 : i32
    return %c0_i32, %c0_i32_0 : i32, i32
  }
  func.func @transform_3(%arg0: i32) -> (i32, i32) {
    %c0_i32 = arith.constant 0 : i32
    %c0_i32_0 = arith.constant 0 : i32
    %c0_i32_1 = arith.constant 0 : i32
    return %c0_i32, %c0_i32_0 : i32, i32
  }
  func.func @transform_4(%arg0: i32) -> (i32, i32) {
    %c0_i32 = arith.constant 0 : i32
    %c0_i32_0 = arith.constant 0 : i32
    %c0_i32_1 = arith.constant 0 : i32
    return %c0_i32, %c0_i32_0 : i32, i32
  }
  func.func @transform_5(%arg0: i32) -> (i32, i32) {
    %c0_i32 = arith.constant 0 : i32
    %c0_i32_0 = arith.constant 0 : i32
    return %c0_i32, %arg0 : i32, i32
  }
}

</mosaic_0001>

<bundles_post_ra>
// kernel: tpu_custom_call.1
= control target key start
LH: loop header
LB: loop body
LE: loop exit
PB: predicated region body
PF: predicated region fallthrough
CT: control target
= control target key end

     0   :  { %v154_v2 = vmov 0   ;;  %s214_s0 = inlined_call_operand.vmem [shape: f32[2,128], index: 0, kind: input, shape index: {}]   ;;  %s215_s1 = inlined_call_operand.vmem [shape: f32[16,2], index: 1, kind: input, shape index: {}]   ;;  %s216_s2 = inlined_call_operand.vmem [shape: f32[16,1], index: 2, kind: input, shape index: {}]   ;;  %s217_s3 = inlined_call_operand.vmem [shape: f32[2,16], index: 3, kind: input, shape index: {}]   ;;  %s218_s4 = inlined_call_operand.vmem [shape: f32[2,1], index: 4, kind: input, shape index: {}]   ;;  %s219_s5 = inlined_call_operand.hbm [shape: f32[2,128], index: 5, kind: output, shape index: {}]  }
   0x1   :  { %v24_v0 = vld [vmem:[%s215_s1 + $0x8] sm:$0xff]  ;;  %v23_v1 = vld [vmem:[%s215_s1] sm:$0xff]  ;;  %121 = vset.pattern.permute.xlu1 %v154_v2  ;;  %119 = vset.pattern.permute.xlu0 %v154_v2 }
   0x2   :  { %v52_v3 = vld [vmem:[%s216_s2 + $0x8] sm:$0xff]  ;;  %32 = vperm.xlu0 %119, %v24_v0   ;;  %27 = vperm.xlu1 %121, %v23_v1  }
   0x3   :  { %10 = vsyncpa [#allocation3], 0  ;;  %123 = vset.pattern.permute.xlu2 %v154_v2  ;;  %v51_v4 = vld [vmem:[%s216_s2] sm:$0xff]  ;;  %v155_v5 = vmov 1   ;;  %vm74_vm0 = vcmask 130048   ;;  %s106_s9 = sshll.u32 %s219_s5, 4  ;;  %s107_s9 = int_to_ptr.hbm [resolvable:$true] %s106_s9 }
   0x4   :  { %60 = vperm.xlu2 %123, %v52_v3   ;;  %v68_v6 = vld [vmem:[%s218_s4] sm:$0x3] }
   0x5   :  { %v126_v10 = vld [vmem:[%s214_s0] ss:$0 sm:$0xff]  ;;  %v127_v11 = vld [vmem:[%s214_s0 + $0x1] ss:$0 sm:$0xff]  ;;  %s156_s0 = smov [#allocation2]  }
   0x6   :  { %v67_v25 = vld [vmem:[%s217_s3] sm:$0x3]  ;;  %s104_s6 = sshll.u32 %s156_s0, 4  ;;  %s105_s6 = int_to_ptr.vmem [resolvable:$true] %s104_s6 }
   0xa   :  { %120 = vset.pattern.permute.xlu0 %v155_v5  ;;  %122 = vset.pattern.permute.xlu1 %v155_v5 }
   0xb   :  { %43 = vperm.xlu0 %120, %v24_v0   ;;  %39 = vperm.xlu1 %122, %v23_v1  }
   0xc   :  { %55 = vperm.xlu2 %123, %v51_v4  }
  0x13   :  { %124 = vset.pattern.permute.xlu1 %v154_v2  ;;  %125 = vset.pattern.permute.xlu0 %v154_v2 }
  0x14   :  { %71 = vperm.xlu1 %124, %v68_v6  }
  0x5e   :  { %v61_v9 = vpop.permute.xlu2 %60 }
  0x66   :  { %v56_v20 = vpop.permute.xlu2 %55 }
  0x74   :  { %v33_v7 = vpop.permute.xlu0 %32  ;;  %v28_v8 = vpop.permute.xlu1 %27 }
  0x75   :  { %v37_v14 = vmul.f32 %v126_v10, %v33_v7  ;;  %v36_v15 = vmul.f32 %v126_v10, %v28_v8 }
  0x7d   :  { %v44_v12 = vpop.permute.xlu0 %43  ;;  %v40_v13 = vpop.permute.xlu1 %39 }
  0x7e   :  { %v48_v16 = vmul.f32 %v127_v11, %v44_v12  ;;  %v47_v17 = vmul.f32 %v127_v11, %v40_v13 }
  0x80   :  { %v49_v18 = vadd.f32 %v47_v17, %v36_v15  ;;  %v50_v19 = vadd.f32 %v48_v16, %v37_v14 }
  0x82   :  { %v64_v21 = vadd.f32 %v61_v9, %v50_v19  ;;  %v63_v22 = vadd.f32 %v56_v20, %v49_v18 }
  0x84   :  { %v66_v23 = vmax.f32 %v64_v21, 0.0  ;;  %v65_v24 = vmax.f32 %v63_v22, 0.0 }
  0x86   :  { %92 = vmatpush.msra.mxu0 %v66_v23  ;;  %v72_v26 = vpop.permute.xlu1 %71 }
  0x88   :  { %93 = vmatpush.msra.mxu0 %v65_v24 }
  0x89   :  { %115 = vmatmul.msk.f32.vlgmr.msra.gmra.mxu0 %vm74_vm0, %v67_v25 }
 0x106   :  { %v95_v27 = vpop.f32.mrf.mxu0 }
 0x107   :  { %v96_v28 = vadd.f32 %v95_v27, %v72_v26 }
 0x109   :  { %98 = vst [vmem:[#allocation2] sm:$0x3] %v96_v28 }
 0x10a   :  { %109 = dma.vmem_to_hbm [thread:$0]  %s105_s6, 32, %s107_s9, [#allocation3]  }
 0x10b   :  { %152 = dma.done.wait [#allocation3], 32  }
 0x10c   :  { %153 = vsyncadd [#allocation3], 4294967264 }
 0x10d   :  { %114 = vsyncpa [#allocation3], 1 }

</bundles_post_ra>
